<compile_context>
chip_gen: v7x
topology: tpu7x:2x2x1
jax: 0.10.0
libtpu: 0.0.40
codegen_flags: <defaults>
</compile_context>

<pallas_src>
import functools

import jax
import jax.numpy as jnp
from jax import lax
from jax.experimental import pallas as pl
from jax.experimental.pallas import tpu as pltpu

LANE = 128


def _round_up(n, m):
    return ((n + m - 1) // m) * m


def actor_net_kernel(action_size, x_ref, w1_ref, b1_ref, w2_ref, b2_ref,
                     w3_ref, b3_ref, out_ref):
    # fc1 + relu  (weights bf16 -> f32 cast on VPU, f32 accumulation on MXU)
    x = x_ref[...]
    h1 = jnp.dot(x, w1_ref[...].astype(jnp.float32),
                 preferred_element_type=jnp.float32) + b1_ref[...]
    h1 = jnp.maximum(h1, 0.0)
    # fc2 + relu
    h2 = jnp.dot(h1, w2_ref[...].astype(jnp.float32),
                 preferred_element_type=jnp.float32) + b2_ref[...]
    h2 = jnp.maximum(h2, 0.0)
    # fc3 + softmax(dim=-1) over the real action columns only
    logits = jnp.dot(h2, w3_ref[...].astype(jnp.float32),
                     preferred_element_type=jnp.float32) + b3_ref[...]
    col = lax.broadcasted_iota(jnp.int32, logits.shape, 1)
    logits = jnp.where(col < action_size, logits, -1e30)
    m = jnp.max(logits, axis=-1, keepdims=True)
    e = jnp.exp(logits - m)
    denom = jnp.sum(e, axis=-1, keepdims=True)
    # Exact division (not approx reciprocal): rows must sum to 1.
    out_ref[...] = (e / denom).astype(out_ref.dtype)


def actor_net_forward(x, params, action_size, block_b=512):
    """x: [B, state_size] float32. Returns softmax action probs [B, action_size]."""
    w1, b1, w2, b2, w3, b3 = params          # lane-padded shapes
    B, S = x.shape
    S_pad, H1 = w1.shape
    H2 = w2.shape[1]
    A_pad = w3.shape[1]

    # Batch tile: multiple of 8 sublanes, capped at block_b, padded batch.
    TB = max(8, min(_round_up(block_b, 8), _round_up(B, 8)))
    B_pad = _round_up(B, TB)
    grid = (B_pad // TB,)

    x_p = jnp.zeros((B_pad, S_pad), jnp.float32).at[:B, :S].set(
        x.astype(jnp.float32))

    flops = 2 * B_pad * (S_pad * H1 + H1 * H2 + H2 * A_pad)
    bytes_accessed = (int(x_p.size) * 4 + B_pad * A_pad * 4
                      + sum(int(p.size) * p.dtype.itemsize for p in params))
    cost = pl.CostEstimate(flops=flops, transcendentals=B_pad * A_pad,
                           bytes_accessed=bytes_accessed)

    def resident(shape):
        # Full-array block, constant index_map -> fetched once, VMEM-resident.
        return pl.BlockSpec(shape, lambda i: (0, 0))

    out = pl.pallas_call(
        functools.partial(actor_net_kernel, action_size),
        out_shape=jax.ShapeDtypeStruct((B_pad, A_pad), jnp.float32),
        grid=grid,
        in_specs=[
            pl.BlockSpec((TB, S_pad), lambda i: (i, 0)),   # x tile (pipelined)
            resident(w1.shape), resident(b1.shape),
            resident(w2.shape), resident(b2.shape),
            resident(w3.shape), resident(b3.shape),
        ],
        out_specs=pl.BlockSpec((TB, A_pad), lambda i: (i, 0)),  # lane-dense out
        compiler_params=pltpu.CompilerParams(
            dimension_semantics=("parallel",)),
        cost_estimate=cost,
    )(x_p, w1, b1, w2, b2, w3, b3)

    return out[:B, :action_size]


def init_actor_params(key, state_size, action_size, hidden_layer):
    """nn.Linear-style init (U(-1/sqrt(fan_in), 1/sqrt(fan_in))), zero-padded to
    128 lanes; weights stored bf16, biases f32 as [1, out_pad]."""
    dims = [(state_size, hidden_layer),
            (hidden_layer, hidden_layer // 2),
            (hidden_layer // 2, action_size)]
    params = []
    for fan_in, fan_out in dims:
        key, kw, kb = jax.random.split(key, 3)
        bound = 1.0 / (fan_in ** 0.5)
        w = jax.random.uniform(kw, (fan_in, fan_out), jnp.float32, -bound, bound)
        b = jax.random.uniform(kb, (fan_out,), jnp.float32, -bound, bound)
        fi_p = _round_up(fan_in, LANE)
        fo_p = _round_up(fan_out, LANE)
        w_p = jnp.zeros((fi_p, fo_p), jnp.float32).at[:fan_in, :fan_out].set(w)
        b_p = jnp.zeros((1, fo_p), jnp.float32).at[0, :fan_out].set(b)
        params += [w_p.astype(jnp.bfloat16), b_p]
    return tuple(params)


def actor_net_reference(x, params, action_size):
    """Pure-JAX reference using the same stored (padded, bf16-weight) params."""
    w1, b1, w2, b2, w3, b3 = params
    B, S = x.shape
    xp = jnp.zeros((B, w1.shape[0]), jnp.float32).at[:, :S].set(x)
    h1 = jnp.maximum(xp @ w1.astype(jnp.float32) + b1, 0.0)
    h2 = jnp.maximum(h1 @ w2.astype(jnp.float32) + b2, 0.0)
    logits = (h2 @ w3.astype(jnp.float32) + b3)[:, :action_size]
    return jax.nn.softmax(logits, axis=-1)


# TODO(synk): ActorCustomLoss and the Adam optimizer are training-time pieces,
# not part of the forward pass, and are intentionally not implemented here.

if __name__ == "__main__":
    # LunarLander-v2: state_size=8, action_size=4; small hidden layer for demo.
    state_size, action_size, hidden_layer = 8, 4, 64

    key = jax.random.PRNGKey(0)
    key, kx = jax.random.split(key)
    params = init_actor_params(key, state_size, action_size, hidden_layer)

    # Small batch: single grid step.
    batch = 8
    x = jax.random.normal(kx, (batch, state_size), jnp.float32)
    probs = jax.block_until_ready(actor_net_forward(x, params, action_size))
    ref = actor_net_reference(x, params, action_size)
    assert probs.shape == (batch, action_size)
    assert jnp.allclose(probs, ref, atol=2e-3, rtol=2e-3)
    assert jnp.allclose(jnp.sum(probs, axis=-1), 1.0, atol=2e-3)

    # Larger, non-tile-multiple batch: exercises the batch grid, padding and
    # double-buffered pipelining (3 grid steps at TB=128).
    batch2 = 300
    key, kx2 = jax.random.split(key)
    x2 = jax.random.normal(kx2, (batch2, state_size), jnp.float32)
    probs2 = jax.block_until_ready(
        actor_net_forward(x2, params, action_size, block_b=128))
    ref2 = actor_net_reference(x2, params, action_size)
    assert probs2.shape == (batch2, action_size)
    assert jnp.allclose(probs2, ref2, atol=2e-3, rtol=2e-3)
    assert jnp.allclose(jnp.sum(probs2, axis=-1), 1.0, atol=2e-3)

    print("KERNEL_OK")
</pallas_src>

<mosaic_0001>
module attributes {stable_mosaic.version = 11 : i64} {
  func.func @actor_net_kernel(%arg0: i32, %arg1: memref<8x128xf32, #tpu.memory_space<vmem>>, %arg2: memref<128x128xbf16, #tpu.memory_space<vmem>>, %arg3: memref<1x128xf32, #tpu.memory_space<vmem>>, %arg4: memref<128x128xbf16, #tpu.memory_space<vmem>>, %arg5: memref<1x128xf32, #tpu.memory_space<vmem>>, %arg6: memref<128x128xbf16, #tpu.memory_space<vmem>>, %arg7: memref<1x128xf32, #tpu.memory_space<vmem>>, %arg8: memref<8x128xf32, #tpu.memory_space<vmem>>) attributes {dimension_semantics = [#tpu.dimension_semantics<parallel>], iteration_bounds = array<i64: 1>, scalar_prefetch = 0 : i64, scratch_operands = 0 : i64, tpu.core_type = #tpu.core_type<tc>, window_params = [{transform_indices = @transform_0, window_bounds = array<i64: 8, 128>}, {pipeline_mode = #tpu.pipeline_mode<synchronous>, transform_indices = @transform_1, window_bounds = array<i64: 128, 128>}, {pipeline_mode = #tpu.pipeline_mode<synchronous>, transform_indices = @transform_2, window_bounds = array<i64: 1, 128>}, {pipeline_mode = #tpu.pipeline_mode<synchronous>, transform_indices = @transform_3, window_bounds = array<i64: 128, 128>}, {pipeline_mode = #tpu.pipeline_mode<synchronous>, transform_indices = @transform_4, window_bounds = array<i64: 1, 128>}, {pipeline_mode = #tpu.pipeline_mode<synchronous>, transform_indices = @transform_5, window_bounds = array<i64: 128, 128>}, {pipeline_mode = #tpu.pipeline_mode<synchronous>, transform_indices = @transform_6, window_bounds = array<i64: 1, 128>}, {transform_indices = @transform_7, window_bounds = array<i64: 8, 128>}]} {
    %c0 = arith.constant 0 : index
    %c0_0 = arith.constant 0 : index
    %0 = vector.load %arg1[%c0, %c0_0] : memref<8x128xf32, #tpu.memory_space<vmem>>, vector<8x128xf32>
    %c0_1 = arith.constant 0 : index
    %c0_2 = arith.constant 0 : index
    %1 = vector.load %arg2[%c0_1, %c0_2] : memref<128x128xbf16, #tpu.memory_space<vmem>>, vector<128x128xbf16>
    %2 = arith.extf %1 : vector<128x128xbf16> to vector<128x128xf32>
    %cst = arith.constant dense<0.000000e+00> : vector<8x128xf32>
    %3 = tpu.matmul %0, %2, %cst {dimension_numbers = #tpu.dot_dimension_numbers<[1], [0], [0], [1], [0, 0, 1, 1], [], []>} : vector<8x128xf32>, vector<128x128xf32>, vector<8x128xf32> -> vector<8x128xf32>
    %c0_3 = arith.constant 0 : index
    %c0_4 = arith.constant 0 : index
    %4 = vector.load %arg3[%c0_3, %c0_4] : memref<1x128xf32, #tpu.memory_space<vmem>>, vector<1x128xf32>
    %5 = vector.broadcast %4 : vector<1x128xf32> to vector<8x128xf32>
    %6 = arith.addf %3, %5 : vector<8x128xf32>
    %cst_5 = arith.constant 0.000000e+00 : f32
    %7 = vector.broadcast %cst_5 : f32 to vector<8x128xf32>
    %8 = arith.maximumf %6, %7 : vector<8x128xf32>
    %c0_6 = arith.constant 0 : index
    %c0_7 = arith.constant 0 : index
    %9 = vector.load %arg4[%c0_6, %c0_7] : memref<128x128xbf16, #tpu.memory_space<vmem>>, vector<128x128xbf16>
    %10 = arith.extf %9 : vector<128x128xbf16> to vector<128x128xf32>
    %cst_8 = arith.constant dense<0.000000e+00> : vector<8x128xf32>
    %11 = tpu.matmul %8, %10, %cst_8 {dimension_numbers = #tpu.dot_dimension_numbers<[1], [0], [0], [1], [0, 0, 1, 1], [], []>} : vector<8x128xf32>, vector<128x128xf32>, vector<8x128xf32> -> vector<8x128xf32>
    %c0_9 = arith.constant 0 : index
    %c0_10 = arith.constant 0 : index
    %12 = vector.load %arg5[%c0_9, %c0_10] : memref<1x128xf32, #tpu.memory_space<vmem>>, vector<1x128xf32>
    %13 = vector.broadcast %12 : vector<1x128xf32> to vector<8x128xf32>
    %14 = arith.addf %11, %13 : vector<8x128xf32>
    %cst_11 = arith.constant 0.000000e+00 : f32
    %15 = vector.broadcast %cst_11 : f32 to vector<8x128xf32>
    %16 = arith.maximumf %14, %15 : vector<8x128xf32>
    %c0_12 = arith.constant 0 : index
    %c0_13 = arith.constant 0 : index
    %17 = vector.load %arg6[%c0_12, %c0_13] : memref<128x128xbf16, #tpu.memory_space<vmem>>, vector<128x128xbf16>
    %18 = arith.extf %17 : vector<128x128xbf16> to vector<128x128xf32>
    %cst_14 = arith.constant dense<0.000000e+00> : vector<8x128xf32>
    %19 = tpu.matmul %16, %18, %cst_14 {dimension_numbers = #tpu.dot_dimension_numbers<[1], [0], [0], [1], [0, 0, 1, 1], [], []>} : vector<8x128xf32>, vector<128x128xf32>, vector<8x128xf32> -> vector<8x128xf32>
    %c0_15 = arith.constant 0 : index
    %c0_16 = arith.constant 0 : index
    %20 = vector.load %arg7[%c0_15, %c0_16] : memref<1x128xf32, #tpu.memory_space<vmem>>, vector<1x128xf32>
    %21 = vector.broadcast %20 : vector<1x128xf32> to vector<8x128xf32>
    %22 = arith.addf %19, %21 : vector<8x128xf32>
    %23 = tpu.iota {dimensions = array<i32: 1>} : vector<8x128xi32>
    %c4_i32 = arith.constant 4 : i32
    %24 = vector.broadcast %c4_i32 : i32 to vector<8x128xi32>
    %25 = arith.cmpi slt, %23, %24 : vector<8x128xi32>
    %cst_17 = arith.constant -1.000000e+30 : f32
    %26 = vector.broadcast %cst_17 : f32 to vector<8x128xf32>
    %27 = arith.select %25, %22, %26 : vector<8x128xi1>, vector<8x128xf32>
    %cst_18 = arith.constant dense<0xFF800000> : vector<8xf32>
    %28 = vector.multi_reduction <maximumf>, %27, %cst_18 [1] : vector<8x128xf32> to vector<8xf32>
    %29 = vector.shape_cast %28 : vector<8xf32> to vector<8x1xf32>
    %30 = vector.broadcast %29 : vector<8x1xf32> to vector<8x128xf32>
    %31 = arith.subf %27, %30 : vector<8x128xf32>
    %32 = math.exp %31 : vector<8x128xf32>
    %cst_19 = arith.constant dense<0.000000e+00> : vector<8xf32>
    %33 = vector.multi_reduction <add>, %32, %cst_19 [1] : vector<8x128xf32> to vector<8xf32>
    %34 = vector.shape_cast %33 : vector<8xf32> to vector<8x1xf32>
    %35 = vector.broadcast %34 : vector<8x1xf32> to vector<8x128xf32>
    %36 = arith.divf %32, %35 : vector<8x128xf32>
    %c0_20 = arith.constant 0 : index
    %c0_21 = arith.constant 0 : index
    %37 = vector.load %arg8[%c0_20, %c0_21] : memref<8x128xf32, #tpu.memory_space<vmem>>, vector<8x128xf32>
    tpu.vector_store %arg8[%c0_20, %c0_21], %36 {strides = array<i32>} : memref<8x128xf32, #tpu.memory_space<vmem>>, vector<8x128xf32>,
    return
  }
  func.func @transform_0(%arg0: i32) -> (i32, i32) {
    %c0_i32 = arith.constant 0 : i32
    %c0_i32_0 = arith.constant 0 : i32
    return %arg0, %c0_i32 : i32, i32
  }
  func.func @transform_1(%arg0: i32) -> (i32, i32) {
    %c0_i32 = arith.constant 0 : i32
    %c0_i32_0 = arith.constant 0 : i32
    %c0_i32_1 = arith.constant 0 : i32
    return %c0_i32, %c0_i32_0 : i32, i32
  }
  func.func @transform_2(%arg0: i32) -> (i32, i32) {
    %c0_i32 = arith.constant 0 : i32
    %c0_i32_0 = arith.constant 0 : i32
    %c0_i32_1 = arith.constant 0 : i32
    return %c0_i32, %c0_i32_0 : i32, i32
  }
  func.func @transform_3(%arg0: i32) -> (i32, i32) {
    %c0_i32 = arith.constant 0 : i32
    %c0_i32_0 = arith.constant 0 : i32
    %c0_i32_1 = arith.constant 0 : i32
    return %c0_i32, %c0_i32_0 : i32, i32
  }
  func.func @transform_4(%arg0: i32) -> (i32, i32) {
    %c0_i32 = arith.constant 0 : i32
    %c0_i32_0 = arith.constant 0 : i32
    %c0_i32_1 = arith.constant 0 : i32
    return %c0_i32, %c0_i32_0 : i32, i32
  }
  func.func @transform_5(%arg0: i32) -> (i32, i32) {
    %c0_i32 = arith.constant 0 : i32
    %c0_i32_0 = arith.constant 0 : i32
    %c0_i32_1 = arith.constant 0 : i32
    return %c0_i32, %c0_i32_0 : i32, i32
  }
  func.func @transform_6(%arg0: i32) -> (i32, i32) {
    %c0_i32 = arith.constant 0 : i32
    %c0_i32_0 = arith.constant 0 : i32
    %c0_i32_1 = arith.constant 0 : i32
    return %c0_i32, %c0_i32_0 : i32, i32
  }
  func.func @transform_7(%arg0: i32) -> (i32, i32) {
    %c0_i32 = arith.constant 0 : i32
    %c0_i32_0 = arith.constant 0 : i32
    return %arg0, %c0_i32 : i32, i32
  }
}

</mosaic_0001>

<bundles_post_ra>
// kernel: tpu_custom_call.1
= control target key start
LH: loop header
LB: loop body
LE: loop exit
PB: predicated region body
PF: predicated region fallthrough
CT: control target
= control target key end

     0   :  { %12 = vsyncpa [#allocation3], 0  ;;  %s1076_s0 = inlined_call_operand.hbm [shape: f32[8,128], index: 0, kind: input, shape index: {}]   ;;  %s1077_s1 = inlined_call_operand.hbm [shape: bf16[128,128], index: 1, kind: input, shape index: {}]   ;;  %s1078_s2 = inlined_call_operand.vmem [shape: f32[1,128], index: 2, kind: input, shape index: {}]   ;;  %s1079_s3 = inlined_call_operand.hbm [shape: bf16[128,128], index: 3, kind: input, shape index: {}]   ;;  %s1080_s4 = inlined_call_operand.vmem [shape: f32[1,128], index: 4, kind: input, shape index: {}]   ;;  %s1081_s5 = inlined_call_operand.hbm [shape: bf16[128,128], index: 5, kind: input, shape index: {}]   ;;  %s1082_s6 = inlined_call_operand.vmem [shape: f32[1,128], index: 6, kind: input, shape index: {}]   ;;  %s1083_s7 = inlined_call_operand.hbm [shape: f32[8,128], index: 7, kind: output, shape index: {}]  }
   0x1   :  { %13 = vsyncpa [#allocation6], 0 }
   0x2   :  { %14 = vsyncpa [#allocation9], 0 }
   0x3   :  { %15 = vsyncpa [#allocation4], 0  ;;  %s921_s24 = smov [#allocation5]   ;;  %s803_s28 = scalar_lea.hbm %s1077_s1, 1024 }
   0x4   :  { %s31_s25 = sshll.u32 %s921_s24, 4  ;;  %p804_p0 = scmp.ne.s32.totalorder %s1077_s1, %s803_s28  ;;  %s32_s25 = int_to_ptr.vmem [resolvable:$true] %s31_s25 }
   0x5   :  { %p807_p1 = scmp.lt.u32.totalorder %s803_s28, %s1077_s1 }
   0x7   :  { %p809_p2 = pnand %p807_p1, %p804_p0 }
   0x9   :  { %812 = shalt.err (!%p809_p2)
}
   0xa   :  { %s813_s10 = scalar_lea.vmem %s32_s25, 1024  ;;  %p818_p4 = scmp.lt.s32.totalorder %s32_s25, %s32_s25 }
   0xb   :  { %p814_p3 = scmp.ne.s32.totalorder %s32_s25, %s813_s10  ;;  %p819_p5 = scmp.lt.s32.totalorder %s813_s10, %s813_s10 }
   0xd   :  { %p820_p6 = por %p819_p5, %p818_p4 }
   0xf   :  { %p821_p7 = pnand %p820_p6, %p814_p3 }
  0x11   :  { %824 = shalt.err (!%p821_p7)
}
  0x12   :  { %s922_s11 = smov 64   ;;  %s923_s12 = smov 4  }
  0x13   :  { %37 = dma.hbm_to_vmem [thread:$0]  %s1077_s1, 1024, %s32_s25, [#allocation6], %s922_s11, %s922_s11, %s923_s12  }
  0x14   :  { %s924_s15 = smov [#allocation2]   ;;  %s925_s17 = smov [#allocation7]  }
  0x15   :  { %s22_s16 = sshll.u32 %s924_s15, 4  ;;  %s45_s18 = sshll.u32 %s925_s17, 4  ;;  %s23_s16 = int_to_ptr.vmem [resolvable:$true] %s22_s16  ;;  %s46_s18 = int_to_ptr.vmem [resolvable:$true] %s45_s18 }
  0x16   :  { %s825_s21 = scalar_lea.hbm %s1076_s0, 128 }
  0x17   :  { %p826_p8 = scmp.ne.s32.totalorder %s1076_s0, %s825_s21  ;;  %p829_p9 = scmp.lt.u32.totalorder %s825_s21, %s1076_s0 }
  0x19   :  { %p831_p10 = pnand %p829_p9, %p826_p8 }
  0x1b   :  { %834 = shalt.err (!%p831_p10)
}
  0x1c   :  { %s835_s1 = scalar_lea.vmem %s23_s16, 128  ;;  %p840_p12 = scmp.lt.s32.totalorder %s23_s16, %s23_s16 }
  0x1d   :  { %p836_p11 = scmp.ne.s32.totalorder %s23_s16, %s835_s1  ;;  %p841_p13 = scmp.lt.s32.totalorder %s835_s1, %s835_s1 }
  0x1f   :  { %p842_p0 = por %p841_p13, %p840_p12 }
  0x21   :  { %p843_p1 = pnand %p842_p0, %p836_p11 }
  0x23   :  { %846 = shalt.err (!%p843_p1)
}
  0x24   :  { %25 = dma.hbm_to_vmem [thread:$0]  %s1076_s0, 128, %s23_s16, [#allocation3]  }
  0x25   :  { %s847_s30 = scalar_lea.hbm %s1079_s3, 1024 }
  0x26   :  { %p848_p2 = scmp.ne.s32.totalorder %s1079_s3, %s847_s30  ;;  %p851_p3 = scmp.lt.u32.totalorder %s847_s30, %s1079_s3 }
  0x28   :  { %p853_p4 = pnand %p851_p3, %p848_p2 }
  0x2a   :  { %856 = shalt.err (!%p853_p4)
}
  0x2b   :  { %s857_s14 = scalar_lea.vmem %s46_s18, 1024  ;;  %p862_p6 = scmp.lt.s32.totalorder %s46_s18, %s46_s18 }
  0x2c   :  { %p858_p5 = scmp.ne.s32.totalorder %s46_s18, %s857_s14  ;;  %p863_p7 = scmp.lt.s32.totalorder %s857_s14, %s857_s14 }
  0x2e   :  { %p864_p8 = por %p863_p7, %p862_p6 }
  0x30   :  { %p865_p9 = pnand %p864_p8, %p858_p5 }
  0x32   :  { %868 = shalt.err (!%p865_p9)
}
  0x33   :  { %51 = dma.hbm_to_vmem [thread:$0]  %s1079_s3, 1024, %s46_s18, [#allocation6], %s922_s11, %s922_s11, %s923_s12  }
  0x34   :  { %s926_s16 = smov [#allocation8]   ;;  %s869_s21 = scalar_lea.hbm %s1081_s5, 1024 }
  0x35   :  { %s59_s17 = sshll.u32 %s926_s16, 4  ;;  %p870_p10 = scmp.ne.s32.totalorder %s1081_s5, %s869_s21  ;;  %s60_s17 = int_to_ptr.vmem [resolvable:$true] %s59_s17 }
  0x36   :  { %p873_p11 = scmp.lt.u32.totalorder %s869_s21, %s1081_s5 }
  0x38   :  { %p875_p12 = pnand %p873_p11, %p870_p10 }
  0x3a   :  { %878 = shalt.err (!%p875_p12)
}
  0x3b   :  { %s879_s1 = scalar_lea.vmem %s60_s17, 1024  ;;  %p884_p0 = scmp.lt.s32.totalorder %s60_s17, %s60_s17 }
  0x3c   :  { %p880_p13 = scmp.ne.s32.totalorder %s60_s17, %s879_s1  ;;  %p885_p1 = scmp.lt.s32.totalorder %s879_s1, %s879_s1 }
  0x3e   :  { %p886_p2 = por %p885_p1, %p884_p0 }
  0x40   :  { %p887_p3 = pnand %p886_p2, %p880_p13 }
  0x42   :  { %890 = shalt.err (!%p887_p3)
}
  0x43   :  { %65 = dma.hbm_to_vmem [thread:$0]  %s1081_s5, 1024, %s60_s17, [#allocation9], %s922_s11, %s922_s11, %s923_s12  }
  0x44   :  { %913 = dma.done.wait [#allocation3], 128  }
  0x45   :  { %914 = vsyncadd [#allocation3], 4294967168 }
  0x46   :  { %915 = dma.done.wait [#allocation6], 2048  }
  0x47   :  { %916 = vsyncadd [#allocation6], 4294965248 }
  0x48   :  { %917 = dma.done.wait [#allocation9], 1024  }
  0x49   :  { %918 = vsyncadd [#allocation9], 4294966272  ;;  %v927_v0 = vmov 0.0|0.0   ;;  %vm928_vm0 = vmmov 0   ;;  %v929_v1 = vmov 0.0   ;;  %v445_v2 = vld [vmem:[#allocation5] sm:$0xff]   ;;  %v410_v37 = vlaneseq }
  0x4a   :  { %717 = vmatprep.subr.bf16.mxu0 %v927_v0  ;;  %644 = vmatprep.mubr.msk.f32.mxu0 %vm928_vm0, %v929_v1  ;;  %v540_v3 = vld [vmem:[#allocation5 + $0x8] sm:$0xff]   ;;  %v477_v4 = vld [vmem:[#allocation7] sm:$0xff]   ;;  %v541_v6 = vld [vmem:[#allocation5 + $0x10] sm:$0xff]  }
  0x4b   :  { %741 = vmatprep.subr.bf16.mxu1 %v927_v0  ;;  %679 = vmatprep.mubr.msk.f32.mxu1 %vm928_vm0, %v929_v1  ;;  %v547_v5 = vld [vmem:[#allocation7 + $0x8] sm:$0xff]   ;;  %v548_v7 = vld [vmem:[#allocation7 + $0x10] sm:$0xff]   ;;  %v542_v8 = vld [vmem:[#allocation5 + $0x18] sm:$0xff]   ;;  %v411_v38 = vand.u32 127, %v410_v37 }
  0x4c   :  { %719 = vmatpush3.bf16.msra.mxu0 %v445_v2  ;;  %743 = vmatpush3.bf16.msra.mxu1 %v477_v4  ;;  %v549_v9 = vld [vmem:[#allocation7 + $0x18] sm:$0xff]   ;;  %v543_v10 = vld [vmem:[#allocation5 + $0x20] sm:$0xff]   ;;  %v544_v12 = vld [vmem:[#allocation5 + $0x28] sm:$0xff]  }
  0x4d   :  { %720 = vmatprep.subr.bf16.mxu0 %v927_v0  ;;  %744 = vmatprep.subr.bf16.mxu1 %v927_v0  ;;  %v550_v11 = vld [vmem:[#allocation7 + $0x20] sm:$0xff]   ;;  %v551_v13 = vld [vmem:[#allocation7 + $0x28] sm:$0xff]   ;;  %v545_v14 = vld [vmem:[#allocation5 + $0x30] sm:$0xff]   ;;  %vm412_vm1 = vcmp.lt.s32.totalorder %v411_v38, 4 }
  0x4e   :  { %v552_v15 = vld [vmem:[#allocation7 + $0x30] sm:$0xff]   ;;  %v546_v16 = vld [vmem:[#allocation5 + $0x38] sm:$0xff]   ;;  %v509_v19 = vld [vmem:[#allocation8] sm:$0xff]  }
  0x4f   :  { %v80_v17 = vld [vmem:[#allocation2] sm:$0xff]  ;;  %v554_v20 = vld [vmem:[#allocation8 + $0x8] sm:$0xff]   ;;  %v555_v21 = vld [vmem:[#allocation8 + $0x10] sm:$0xff]  }
  0x50   :  { %722 = vmatpush3.bf16.msra.mxu0 %v540_v3  ;;  %746 = vmatpush3.bf16.msra.mxu1 %v547_v5  ;;  %v553_v18 = vld [vmem:[#allocation7 + $0x38] sm:$0xff]   ;;  %v557_v23 = vld [vmem:[#allocation8 + $0x20] sm:$0xff]   ;;  %v558_v24 = vld [vmem:[#allocation8 + $0x28] sm:$0xff]  }
  0x51   :  { %723 = vmatprep.subr.bf16.mxu0 %v927_v0  ;;  %747 = vmatprep.subr.bf16.mxu1 %v927_v0  ;;  %v556_v22 = vld [vmem:[#allocation8 + $0x18] sm:$0xff]   ;;  %v559_v25 = vld [vmem:[#allocation8 + $0x30] sm:$0xff]  }
  0x52   :  { %v441_v26 = vld [vmem:[%s1078_s2] ss:$0 sm:$0xff] }
  0x53   :  { %v560_v31 = vld [vmem:[#allocation8 + $0x38] sm:$0xff]  }
  0x54   :  { %725 = vmatpush3.bf16.msra.mxu0 %v541_v6  ;;  %749 = vmatpush3.bf16.msra.mxu1 %v548_v7  ;;  %v442_v32 = vld [vmem:[%s1080_s4] ss:$0 sm:$0xff]  ;;  %s930_s4 = smov [#allocation10]  }
  0x55   :  { %726 = vmatprep.subr.bf16.mxu0 %v927_v0  ;;  %750 = vmatprep.subr.bf16.mxu1 %v927_v0  ;;  %v443_v39 = vld [vmem:[%s1082_s6] ss:$0 sm:$0xff]  ;;  %s430_s28 = sshll.u32 %s930_s4, 4  ;;  %s431_s28 = int_to_ptr.vmem [resolvable:$true] %s430_s28 }
  0x56   :  { %s891_s6 = scalar_lea.vmem %s431_s28, 128  ;;  %p896_p5 = scmp.lt.s32.totalorder %s431_s28, %s431_s28 }
  0x57   :  { %p892_p4 = scmp.ne.s32.totalorder %s431_s28, %s891_s6  ;;  %p897_p6 = scmp.lt.s32.totalorder %s891_s6, %s891_s6 }
  0x58   :  { %728 = vmatpush3.bf16.msra.mxu0 %v542_v8  ;;  %752 = vmatpush3.bf16.msra.mxu1 %v549_v9 }
  0x59   :  { %729 = vmatprep.subr.bf16.mxu0 %v927_v0  ;;  %753 = vmatprep.subr.bf16.mxu1 %v927_v0  ;;  %p898_p7 = por %p897_p6, %p896_p5 }
  0x5b   :  { %p899_p8 = pnand %p898_p7, %p892_p4 }
  0x5c   :  { %731 = vmatpush3.bf16.msra.mxu0 %v543_v10  ;;  %755 = vmatpush3.bf16.msra.mxu1 %v550_v11 }
  0x5d   :  { %732 = vmatprep.subr.bf16.mxu0 %v927_v0  ;;  %756 = vmatprep.subr.bf16.mxu1 %v927_v0 }
  0x60   :  { %734 = vmatpush3.bf16.msra.mxu0 %v544_v12  ;;  %758 = vmatpush3.bf16.msra.mxu1 %v551_v13 }
  0x61   :  { %735 = vmatprep.subr.bf16.mxu0 %v927_v0  ;;  %759 = vmatprep.subr.bf16.mxu1 %v927_v0 }
  0x64   :  { %737 = vmatpush3.bf16.msra.mxu0 %v545_v14  ;;  %761 = vmatpush3.bf16.msra.mxu1 %v552_v15 }
  0x65   :  { %738 = vmatprep.subr.bf16.mxu0 %v927_v0  ;;  %762 = vmatprep.subr.bf16.mxu1 %v927_v0 }
  0x68   :  { %740 = vmatpush3.bf16.msra.mxu0 %v546_v16  ;;  %764 = vmatpush3.bf16.msra.mxu1 %v553_v18 }
  0x69   :  { %765 = vmatprep.subr.bf16.mxu0 %v927_v0 }
  0x6b   :  { %645 = vmatmul.mubr.f32.vlgmr.msra.gmra.mrb[0].mxu0 %v80_v17 }
  0x6c   :  { %714 = vmatprep.mubr.msk.f32.mxu0 %vm928_vm0, %v929_v1  ;;  %767 = vmatpush3.bf16.msra.mxu0 %v509_v19 }
  0x6d   :  { %768 = vmatprep.subr.bf16.mxu0 %v927_v0 }
  0x70   :  { %770 = vmatpush3.bf16.msra.mxu0 %v554_v20 }
  0x71   :  { %771 = vmatprep.subr.bf16.mxu0 %v927_v0 }
  0x74   :  { %773 = vmatpush3.bf16.msra.mxu0 %v555_v21 }
  0x75   :  { %774 = vmatprep.subr.bf16.mxu0 %v927_v0 }
  0x78   :  { %776 = vmatpush3.bf16.msra.mxu0 %v556_v22 }
  0x79   :  { %777 = vmatprep.subr.bf16.mxu0 %v927_v0 }
  0x7c   :  { %779 = vmatpush3.bf16.msra.mxu0 %v557_v23 }
  0x7d   :  { %780 = vmatprep.subr.bf16.mxu0 %v927_v0 }
  0x80   :  { %782 = vmatpush3.bf16.msra.mxu0 %v558_v24 }
  0x81   :  { %783 = vmatprep.subr.bf16.mxu0 %v927_v0 }
  0x84   :  { %785 = vmatpush3.bf16.msra.mxu0 %v559_v25 }
  0x85   :  { %786 = vmatprep.subr.bf16.mxu0 %v927_v0 }
  0x88   :  { %788 = vmatpush3.bf16.msra.mxu0 %v560_v31 }
 0x13e   :  { %v186_v27 = vpop.f32.mrb[0].mxu0 }
 0x13f   :  { %v187_v28 = vadd.f32 %v441_v26, %v186_v27  ;;  %v646_v29 = vpop.f32.mrb[1].mxu0 }
 0x141   :  { %v190_v30 = vmax.f32 %v187_v28, 0.0 }
 0x143   :  { %680 = vmatmul.mubr.f32.vlgmr.msra.gmra.mrb[0].mxu1 %v190_v30 }
 0x216   :  { %v296_v33 = vpop.f32.mrb[0].mxu1 }
 0x217   :  { %v297_v34 = vadd.f32 %v442_v32, %v296_v33  ;;  %v681_v35 = vpop.f32.mrb[1].mxu1 }
 0x219   :  { %v300_v36 = vmax.f32 %v297_v34, 0.0 }
 0x21b   :  { %715 = vmatmul.mubr.f32.vlgmr.msra.gmra.mrb[2].mxu0 %v300_v36 }
 0x2ee   :  { %v406_v40 = vpop.f32.mrb[2].mxu0 }
 0x2ef   :  { %v407_v41 = vadd.f32 %v443_v39, %v406_v40  ;;  %v716_v42 = vpop.f32.mrb[3].mxu0 }
 0x2f1   :  { %v413_v43 = vsel %vm412_vm1, %v407_v41, -1e+30 }
 0x2f2   :  { %414 = vmax.xlane.f32.xlu0 %v413_v43 }
 0x37f   :  { %v415_v44 = vpop.xlane.xlu0 %414 }
 0x380   :  { %v416_v45 = vsub.f32 %v413_v43, %v415_v44 }
 0x382   :  { %v417_v46 = vmul.f32 1.442695, %v416_v45 }
 0x384   :  { %799 = vpow2.f32 %v417_v46 }
 0x38e   :  { %v800_v47 = vpop.eup %799 }
 0x38f   :  { %419 = vadd.xlane.f32.xlu0 %v800_v47 }
 0x41c   :  { %v420_v48 = vpop.xlane.xlu0 %419 }
 0x41d   :  { %801 = vrcp.f32 %v420_v48 }
 0x427   :  { %v802_v49 = vpop.eup %801 }
 0x428   :  { %v422_v50 = vmul.f32 %v802_v49, %v800_v47 }
 0x42a   :  { %423 = vst [vmem:[#allocation10] sm:$0xff] %v422_v50 }
 0x42b   :  { %902 = shalt.err (!%p899_p8)
}
 0x42c   :  { %s903_s8 = scalar_lea.hbm %s1083_s7, 128 }
 0x42d   :  { %p904_p9 = scmp.ne.s32.totalorder %s1083_s7, %s903_s8  ;;  %p907_p10 = scmp.lt.u32.totalorder %s903_s8, %s1083_s7 }
 0x42f   :  { %p909_p11 = pnand %p907_p10, %p904_p9 }
 0x431   :  { %912 = shalt.err (!%p909_p11)
}
 0x432   :  { %433 = dma.vmem_to_hbm [thread:$0]  %s431_s28, 128, %s1083_s7, [#allocation4]  }
 0x433   :  { %919 = dma.done.wait [#allocation4], 128  }
 0x434   :  { %920 = vsyncadd [#allocation4], 4294967168 }
 0x435   :  { %437 = vsyncpa [#allocation3], 1 }
 0x436   :  { %438 = vsyncpa [#allocation6], 1 }
 0x437   :  { %439 = vsyncpa [#allocation9], 1 }
 0x438   :  { %440 = vsyncpa [#allocation4], 1 }

</bundles_post_ra>
